<compile_context>
chip_gen: v7x
topology: tpu7x:2x2x1
jax: 0.10.0
libtpu: 0.0.40
codegen_flags: <defaults>
</compile_context>

<pallas_src>
import functools
import math

import jax
import jax.numpy as jnp
from jax.experimental import pallas as pl
from jax.experimental.pallas import tpu as pltpu


def _round_up(x, m):
    return ((x + m - 1) // m) * m


def _ppo_kernel(x_ref, w1_ref, b1_ref, w2_ref, b2_ref,
                wh_ref, bh_ref, wo_ref, bo_ref, out_ref, *, action_dim):
    """One batch tile of the fused PPO actor-critic forward pass."""
    x = x_ref[...]                                     # [TB, OBS_PAD] bf16
    # Shared trunk: Linear -> ReLU -> Linear -> ReLU (f32 accumulation / activations).
    h1 = jnp.maximum(
        jnp.dot(x, w1_ref[...], preferred_element_type=jnp.float32) + b1_ref[...], 0.0)
    h2 = jnp.maximum(
        jnp.dot(h1.astype(w2_ref.dtype), w2_ref[...],
                preferred_element_type=jnp.float32) + b2_ref[...], 0.0)
    # Fused actor/critic hidden layers: one [HID, 2*HID] matmul, ReLU on both halves.
    hh = jnp.maximum(
        jnp.dot(h2.astype(wh_ref.dtype), wh_ref[...],
                preferred_element_type=jnp.float32) + bh_ref[...], 0.0)
    # Packed lane-dense output head: block-diagonal [2*HID, OUT_PAD] weight produces
    # actor pre-activations in lanes [0, action_dim) and the state value in lane action_dim.
    z = jnp.dot(hh.astype(wo_ref.dtype), wo_ref[...],
                preferred_element_type=jnp.float32) + bo_ref[...]
    lane = jax.lax.broadcasted_iota(jnp.int32, z.shape, 1)
    # NOTE: as in the original module, the "actor_logits" output actually holds
    # sigmoid probabilities.
    out = jnp.where(lane < action_dim, jax.nn.sigmoid(z), z)
    out_ref[...] = out.astype(out_ref.dtype)


def _xavier_uniform(key, fan_in, fan_out):
    # Matches torch.nn.init.xavier_uniform_ (gain=1): U(-a, a), a = sqrt(6/(fan_in+fan_out)).
    a = math.sqrt(6.0 / (fan_in + fan_out))
    # Stored as [in, out] (transposed vs. torch's [out, in]); distribution is symmetric.
    return jax.random.uniform(key, (fan_in, fan_out), jnp.float32, minval=-a, maxval=a)


def init_params(key, observation_dim, action_dim, hidden_size=256):
    keys = jax.random.split(key, 6)
    return {
        "w1": _xavier_uniform(keys[0], observation_dim, hidden_size),
        "b1": jnp.zeros((1, hidden_size), jnp.float32),
        "w2": _xavier_uniform(keys[1], hidden_size, hidden_size),
        "b2": jnp.zeros((1, hidden_size), jnp.float32),
        "wa": _xavier_uniform(keys[2], hidden_size, hidden_size),
        "ba": jnp.zeros((1, hidden_size), jnp.float32),
        "wao": _xavier_uniform(keys[3], hidden_size, action_dim),
        "bao": jnp.zeros((1, action_dim), jnp.float32),
        "wc": _xavier_uniform(keys[4], hidden_size, hidden_size),
        "bc": jnp.zeros((1, hidden_size), jnp.float32),
        "wco": _xavier_uniform(keys[5], hidden_size, 1),
        "bco": jnp.zeros((1, 1), jnp.float32),
    }


def pack_params(params, observation_dim, action_dim, hidden_size,
                param_dtype=jnp.bfloat16):
    """Pads / fuses raw parameters into the kernel's lane-aligned bf16 layout."""
    obs_pad = _round_up(max(observation_dim, 1), 128)
    hid_pad = _round_up(max(hidden_size, 1), 128)
    out_pad = _round_up(action_dim + 1, 128)

    def pad2(w, rows, cols):
        return jnp.zeros((rows, cols), jnp.float32).at[:w.shape[0], :w.shape[1]].set(w)

    def padb(b, cols):
        return jnp.zeros((1, cols), jnp.float32).at[:, :b.shape[1]].set(b)

    w1 = pad2(params["w1"], obs_pad, hid_pad)
    w2 = pad2(params["w2"], hid_pad, hid_pad)
    # Fused actor/critic hidden weights: [hid_pad, 2*hid_pad].
    wh = jnp.concatenate([pad2(params["wa"], hid_pad, hid_pad),
                          pad2(params["wc"], hid_pad, hid_pad)], axis=1)
    # Block-diagonal packed output weight: actor_out in cols [0, action_dim),
    # critic_out in col action_dim, everything else zero.
    wo = jnp.zeros((2 * hid_pad, out_pad), jnp.float32)
    wo = wo.at[:hidden_size, :action_dim].set(params["wao"])
    wo = wo.at[hid_pad:hid_pad + hidden_size, action_dim:action_dim + 1].set(params["wco"])

    b1 = padb(params["b1"], hid_pad)
    b2 = padb(params["b2"], hid_pad)
    bh = jnp.concatenate([padb(params["ba"], hid_pad), padb(params["bc"], hid_pad)], axis=1)
    bo = jnp.zeros((1, out_pad), jnp.float32)
    bo = bo.at[:, :action_dim].set(params["bao"])
    bo = bo.at[:, action_dim:action_dim + 1].set(params["bco"])

    return {
        "w1": w1.astype(param_dtype), "b1": b1,
        "w2": w2.astype(param_dtype), "b2": b2,
        "wh": wh.astype(param_dtype), "bh": bh,
        "wo": wo.astype(param_dtype), "bo": bo,
        "dims": (observation_dim, action_dim, hidden_size, obs_pad, hid_pad, out_pad),
    }


def ppo_actor_critic_forward(x, packed, *, batch_tile=512):
    """Runs the PPOActorCritic forward pass with a batch-tiled Pallas kernel.

    Returns (actor_probs [batch, action_dim], state_value [batch, 1]).
    """
    obs_dim, action_dim, _hidden, obs_pad, hid_pad, out_pad = packed["dims"]
    batch = x.shape[0]
    tb = min(batch_tile, _round_up(batch, 8))     # batch tile (multiple of 8 sublanes)
    b_pad = _round_up(batch, tb)

    # Observations in the lane-aligned, bf16 kernel layout. Skip the pad copy when the
    # shapes are already aligned (only a dtype cast remains).
    in_dtype = packed["w1"].dtype
    if b_pad == batch and obs_pad == obs_dim:
        x_pad = x.astype(in_dtype)
    else:
        x_pad = jnp.zeros((b_pad, obs_pad), in_dtype)
        x_pad = x_pad.at[:batch, :obs_dim].set(x.astype(in_dtype))

    weight_args = (packed["w1"], packed["b1"], packed["w2"], packed["b2"],
                   packed["wh"], packed["bh"], packed["wo"], packed["bo"])
    # Weights/biases: full-array blocks, constant index_map -> resident across the grid.
    const_specs = [pl.BlockSpec(a.shape, lambda i: (0, 0)) for a in weight_args]

    flops = 2 * b_pad * (obs_pad * hid_pad + hid_pad * hid_pad
                         + hid_pad * 2 * hid_pad + 2 * hid_pad * out_pad)
    bytes_accessed = (x_pad.size * x_pad.dtype.itemsize
                      + sum(a.size * a.dtype.itemsize for a in weight_args)
                      + b_pad * out_pad * 4)

    weight_bytes = sum(a.size * a.dtype.itemsize for a in weight_args)
    tile_bytes = 2 * (tb * obs_pad * x_pad.dtype.itemsize + tb * out_pad * 4)  # dbl-buffered
    act_bytes = 6 * tb * 2 * hid_pad * 4                                       # headroom
    vmem_limit = int(min(100 * 1024 * 1024,
                         max(32 * 1024 * 1024,
                             2 * (weight_bytes + tile_bytes + act_bytes))))

    out = pl.pallas_call(
        functools.partial(_ppo_kernel, action_dim=action_dim),
        out_shape=jax.ShapeDtypeStruct((b_pad, out_pad), jnp.float32),
        grid=(b_pad // tb,),
        in_specs=[pl.BlockSpec((tb, obs_pad), lambda i: (i, 0))] + const_specs,
        out_specs=pl.BlockSpec((tb, out_pad), lambda i: (i, 0)),
        compiler_params=pltpu.CompilerParams(
            dimension_semantics=("parallel",),
            vmem_limit_bytes=vmem_limit),
        cost_estimate=pl.CostEstimate(
            flops=int(flops),
            transcendentals=int(b_pad * out_pad),
            bytes_accessed=int(bytes_accessed)),
    )(x_pad, *weight_args)

    actor_probs = out[:batch, :action_dim]
    state_value = out[:batch, action_dim:action_dim + 1]
    return actor_probs, state_value


def _reference_forward_f32(x, p):
    relu = lambda t: jnp.maximum(t, 0.0)
    h = relu(x @ p["w1"] + p["b1"])
    h = relu(h @ p["w2"] + p["b2"])
    a = relu(h @ p["wa"] + p["ba"])
    actor = jax.nn.sigmoid(a @ p["wao"] + p["bao"])
    c = relu(h @ p["wc"] + p["bc"])
    value = c @ p["wco"] + p["bco"]
    return actor, value


def _reference_forward_packed(x, pk):
    """Mirrors the kernel math (bf16 weights, f32 accumulation) in plain JAX."""
    obs_dim, action_dim, _hidden, obs_pad, _hid_pad, _out_pad = pk["dims"]
    batch = x.shape[0]
    xb = jnp.zeros((batch, obs_pad), pk["w1"].dtype).at[:, :obs_dim].set(
        x.astype(pk["w1"].dtype))
    relu = lambda t: jnp.maximum(t, 0.0)
    dot = lambda a, w: jnp.dot(a.astype(w.dtype), w, preferred_element_type=jnp.float32)
    h1 = relu(dot(xb, pk["w1"]) + pk["b1"])
    h2 = relu(dot(h1, pk["w2"]) + pk["b2"])
    hh = relu(dot(h2, pk["wh"]) + pk["bh"])
    z = dot(hh, pk["wo"]) + pk["bo"]
    return jax.nn.sigmoid(z[:, :action_dim]), z[:, action_dim:action_dim + 1]


if __name__ == "__main__":
    observation_dim = 16
    action_dim = 4
    hidden_size = 32
    batch = 8

    key = jax.random.PRNGKey(0)
    k_params, k_x = jax.random.split(key)

    params = init_params(k_params, observation_dim, action_dim, hidden_size)
    packed = pack_params(params, observation_dim, action_dim, hidden_size)
    x = jax.random.normal(k_x, (batch, observation_dim), jnp.float32)

    actor_probs, state_value = ppo_actor_critic_forward(x, packed)
    jax.block_until_ready((actor_probs, state_value))

    assert actor_probs.shape == (batch, action_dim)
    assert state_value.shape == (batch, 1)

    # Tight check vs. a JAX reference using the same packed bf16 weights.
    ref_a, ref_v = _reference_forward_packed(x, packed)
    assert jnp.allclose(actor_probs, ref_a, atol=1e-2, rtol=1e-2)
    assert jnp.allclose(state_value, ref_v, atol=1e-2, rtol=1e-2)

    # Loose semantic check vs. the pure-f32 reference of the original module
    # (tolerance relaxed due to bf16 weight storage).
    f32_a, f32_v = _reference_forward_f32(x, params)
    assert jnp.allclose(actor_probs, f32_a, atol=0.25, rtol=0.25)
    assert jnp.allclose(state_value, f32_v, atol=0.25, rtol=0.25)

    # TODO(synk): act()/evaluate_actions() Bernoulli sampling/log-prob/entropy are
    # host-side distribution utilities, not part of the forward hot path; left in JAX.
    print("KERNEL_OK")
</pallas_src>

<mosaic_0001>
module attributes {stable_mosaic.version = 11 : i64} {
  func.func @_ppo_kernel(%arg0: i32, %arg1: memref<8x128xbf16, #tpu.memory_space<vmem>>, %arg2: memref<128x128xbf16, #tpu.memory_space<vmem>>, %arg3: memref<1x128xf32, #tpu.memory_space<vmem>>, %arg4: memref<128x128xbf16, #tpu.memory_space<vmem>>, %arg5: memref<1x128xf32, #tpu.memory_space<vmem>>, %arg6: memref<128x256xbf16, #tpu.memory_space<vmem>>, %arg7: memref<1x256xf32, #tpu.memory_space<vmem>>, %arg8: memref<256x128xbf16, #tpu.memory_space<vmem>>, %arg9: memref<1x128xf32, #tpu.memory_space<vmem>>, %arg10: memref<8x128xf32, #tpu.memory_space<vmem>>) attributes {dimension_semantics = [#tpu.dimension_semantics<parallel>], iteration_bounds = array<i64: 1>, scalar_prefetch = 0 : i64, scratch_operands = 0 : i64, tpu.core_type = #tpu.core_type<tc>, window_params = [{transform_indices = @transform_0, window_bounds = array<i64: 8, 128>}, {pipeline_mode = #tpu.pipeline_mode<synchronous>, transform_indices = @transform_1, window_bounds = array<i64: 128, 128>}, {pipeline_mode = #tpu.pipeline_mode<synchronous>, transform_indices = @transform_2, window_bounds = array<i64: 1, 128>}, {pipeline_mode = #tpu.pipeline_mode<synchronous>, transform_indices = @transform_3, window_bounds = array<i64: 128, 128>}, {pipeline_mode = #tpu.pipeline_mode<synchronous>, transform_indices = @transform_4, window_bounds = array<i64: 1, 128>}, {pipeline_mode = #tpu.pipeline_mode<synchronous>, transform_indices = @transform_5, window_bounds = array<i64: 128, 256>}, {pipeline_mode = #tpu.pipeline_mode<synchronous>, transform_indices = @transform_6, window_bounds = array<i64: 1, 256>}, {pipeline_mode = #tpu.pipeline_mode<synchronous>, transform_indices = @transform_7, window_bounds = array<i64: 256, 128>}, {pipeline_mode = #tpu.pipeline_mode<synchronous>, transform_indices = @transform_8, window_bounds = array<i64: 1, 128>}, {transform_indices = @transform_9, window_bounds = array<i64: 8, 128>}]} {
    %c0 = arith.constant 0 : index
    %c0_0 = arith.constant 0 : index
    %0 = vector.load %arg1[%c0, %c0_0] : memref<8x128xbf16, #tpu.memory_space<vmem>>, vector<8x128xbf16>
    %c0_1 = arith.constant 0 : index
    %c0_2 = arith.constant 0 : index
    %1 = vector.load %arg2[%c0_1, %c0_2] : memref<128x128xbf16, #tpu.memory_space<vmem>>, vector<128x128xbf16>
    %cst = arith.constant dense<0.000000e+00> : vector<8x128xf32>
    %2 = tpu.matmul %0, %1, %cst {dimension_numbers = #tpu.dot_dimension_numbers<[1], [0], [0], [1], [0, 0, 1, 1], [], []>} : vector<8x128xbf16>, vector<128x128xbf16>, vector<8x128xf32> -> vector<8x128xf32>
    %c0_3 = arith.constant 0 : index
    %c0_4 = arith.constant 0 : index
    %3 = vector.load %arg3[%c0_3, %c0_4] : memref<1x128xf32, #tpu.memory_space<vmem>>, vector<1x128xf32>
    %4 = vector.broadcast %3 : vector<1x128xf32> to vector<8x128xf32>
    %5 = arith.addf %2, %4 : vector<8x128xf32>
    %cst_5 = arith.constant 0.000000e+00 : f32
    %6 = vector.broadcast %cst_5 : f32 to vector<8x128xf32>
    %7 = arith.maximumf %5, %6 : vector<8x128xf32>
    %8 = arith.truncf %7 : vector<8x128xf32> to vector<8x128xbf16>
    %c0_6 = arith.constant 0 : index
    %c0_7 = arith.constant 0 : index
    %9 = vector.load %arg4[%c0_6, %c0_7] : memref<128x128xbf16, #tpu.memory_space<vmem>>, vector<128x128xbf16>
    %cst_8 = arith.constant dense<0.000000e+00> : vector<8x128xf32>
    %10 = tpu.matmul %8, %9, %cst_8 {dimension_numbers = #tpu.dot_dimension_numbers<[1], [0], [0], [1], [0, 0, 1, 1], [], []>} : vector<8x128xbf16>, vector<128x128xbf16>, vector<8x128xf32> -> vector<8x128xf32>
    %c0_9 = arith.constant 0 : index
    %c0_10 = arith.constant 0 : index
    %11 = vector.load %arg5[%c0_9, %c0_10] : memref<1x128xf32, #tpu.memory_space<vmem>>, vector<1x128xf32>
    %12 = vector.broadcast %11 : vector<1x128xf32> to vector<8x128xf32>
    %13 = arith.addf %10, %12 : vector<8x128xf32>
    %cst_11 = arith.constant 0.000000e+00 : f32
    %14 = vector.broadcast %cst_11 : f32 to vector<8x128xf32>
    %15 = arith.maximumf %13, %14 : vector<8x128xf32>
    %16 = arith.truncf %15 : vector<8x128xf32> to vector<8x128xbf16>
    %c0_12 = arith.constant 0 : index
    %c0_13 = arith.constant 0 : index
    %17 = vector.load %arg6[%c0_12, %c0_13] : memref<128x256xbf16, #tpu.memory_space<vmem>>, vector<128x256xbf16>
    %cst_14 = arith.constant dense<0.000000e+00> : vector<8x256xf32>
    %18 = tpu.matmul %16, %17, %cst_14 {dimension_numbers = #tpu.dot_dimension_numbers<[1], [0], [0], [1], [0, 0, 1, 1], [], []>} : vector<8x128xbf16>, vector<128x256xbf16>, vector<8x256xf32> -> vector<8x256xf32>
    %c0_15 = arith.constant 0 : index
    %c0_16 = arith.constant 0 : index
    %19 = vector.load %arg7[%c0_15, %c0_16] : memref<1x256xf32, #tpu.memory_space<vmem>>, vector<1x256xf32>
    %20 = vector.broadcast %19 : vector<1x256xf32> to vector<8x256xf32>
    %21 = arith.addf %18, %20 : vector<8x256xf32>
    %cst_17 = arith.constant 0.000000e+00 : f32
    %22 = vector.broadcast %cst_17 : f32 to vector<8x256xf32>
    %23 = arith.maximumf %21, %22 : vector<8x256xf32>
    %24 = arith.truncf %23 : vector<8x256xf32> to vector<8x256xbf16>
    %c0_18 = arith.constant 0 : index
    %c0_19 = arith.constant 0 : index
    %25 = vector.load %arg8[%c0_18, %c0_19] : memref<256x128xbf16, #tpu.memory_space<vmem>>, vector<256x128xbf16>
    %cst_20 = arith.constant dense<0.000000e+00> : vector<8x128xf32>
    %26 = tpu.matmul %24, %25, %cst_20 {dimension_numbers = #tpu.dot_dimension_numbers<[1], [0], [0], [1], [0, 0, 1, 1], [], []>} : vector<8x256xbf16>, vector<256x128xbf16>, vector<8x128xf32> -> vector<8x128xf32>
    %c0_21 = arith.constant 0 : index
    %c0_22 = arith.constant 0 : index
    %27 = vector.load %arg9[%c0_21, %c0_22] : memref<1x128xf32, #tpu.memory_space<vmem>>, vector<1x128xf32>
    %28 = vector.broadcast %27 : vector<1x128xf32> to vector<8x128xf32>
    %29 = arith.addf %26, %28 : vector<8x128xf32>
    %30 = tpu.iota {dimensions = array<i32: 1>} : vector<8x128xi32>
    %c4_i32 = arith.constant 4 : i32
    %31 = vector.broadcast %c4_i32 : i32 to vector<8x128xi32>
    %32 = arith.cmpi slt, %30, %31 : vector<8x128xi32>
    %33 = arith.negf %29 : vector<8x128xf32>
    %34 = math.exp %33 : vector<8x128xf32>
    %cst_23 = arith.constant 1.000000e+00 : f32
    %35 = vector.broadcast %cst_23 : f32 to vector<8x128xf32>
    %36 = arith.addf %35, %34 : vector<8x128xf32>
    %37 = arith.divf %35, %36 : vector<8x128xf32>
    %38 = arith.select %32, %37, %29 : vector<8x128xi1>, vector<8x128xf32>
    %c0_24 = arith.constant 0 : index
    %c0_25 = arith.constant 0 : index
    %39 = vector.load %arg10[%c0_24, %c0_25] : memref<8x128xf32, #tpu.memory_space<vmem>>, vector<8x128xf32>
    tpu.vector_store %arg10[%c0_24, %c0_25], %38 {strides = array<i32>} : memref<8x128xf32, #tpu.memory_space<vmem>>, vector<8x128xf32>,
    return
  }
  func.func @transform_0(%arg0: i32) -> (i32, i32) {
    %c0_i32 = arith.constant 0 : i32
    %c0_i32_0 = arith.constant 0 : i32
    return %arg0, %c0_i32 : i32, i32
  }
  func.func @transform_1(%arg0: i32) -> (i32, i32) {
    %c0_i32 = arith.constant 0 : i32
    %c0_i32_0 = arith.constant 0 : i32
    %c0_i32_1 = arith.constant 0 : i32
    return %c0_i32, %c0_i32_0 : i32, i32
  }
  func.func @transform_2(%arg0: i32) -> (i32, i32) {
    %c0_i32 = arith.constant 0 : i32
    %c0_i32_0 = arith.constant 0 : i32
    %c0_i32_1 = arith.constant 0 : i32
    return %c0_i32, %c0_i32_0 : i32, i32
  }
  func.func @transform_3(%arg0: i32) -> (i32, i32) {
    %c0_i32 = arith.constant 0 : i32
    %c0_i32_0 = arith.constant 0 : i32
    %c0_i32_1 = arith.constant 0 : i32
    return %c0_i32, %c0_i32_0 : i32, i32
  }
  func.func @transform_4(%arg0: i32) -> (i32, i32) {
    %c0_i32 = arith.constant 0 : i32
    %c0_i32_0 = arith.constant 0 : i32
    %c0_i32_1 = arith.constant 0 : i32
    return %c0_i32, %c0_i32_0 : i32, i32
  }
  func.func @transform_5(%arg0: i32) -> (i32, i32) {
    %c0_i32 = arith.constant 0 : i32
    %c0_i32_0 = arith.constant 0 : i32
    %c0_i32_1 = arith.constant 0 : i32
    return %c0_i32, %c0_i32_0 : i32, i32
  }
  func.func @transform_6(%arg0: i32) -> (i32, i32) {
    %c0_i32 = arith.constant 0 : i32
    %c0_i32_0 = arith.constant 0 : i32
    %c0_i32_1 = arith.constant 0 : i32
    return %c0_i32, %c0_i32_0 : i32, i32
  }
  func.func @transform_7(%arg0: i32) -> (i32, i32) {
    %c0_i32 = arith.constant 0 : i32
    %c0_i32_0 = arith.constant 0 : i32
    %c0_i32_1 = arith.constant 0 : i32
    return %c0_i32, %c0_i32_0 : i32, i32
  }
  func.func @transform_8(%arg0: i32) -> (i32, i32) {
    %c0_i32 = arith.constant 0 : i32
    %c0_i32_0 = arith.constant 0 : i32
    %c0_i32_1 = arith.constant 0 : i32
    return %c0_i32, %c0_i32_0 : i32, i32
  }
  func.func @transform_9(%arg0: i32) -> (i32, i32) {
    %c0_i32 = arith.constant 0 : i32
    %c0_i32_0 = arith.constant 0 : i32
    return %arg0, %c0_i32 : i32, i32
  }
}

</mosaic_0001>

<bundles_post_ra>
// kernel: tpu_custom_call.1
= control target key start
LH: loop header
LB: loop body
LE: loop exit
PB: predicated region body
PF: predicated region fallthrough
CT: control target
= control target key end

     0   :  { %14 = vsyncpa [#allocation3], 0  ;;  %s1191_s0 = inlined_call_operand.hbm [shape: bf16[8,128], index: 0, kind: input, shape index: {}]   ;;  %s1192_s1 = inlined_call_operand.hbm [shape: bf16[128,128], index: 1, kind: input, shape index: {}]   ;;  %s1193_s2 = inlined_call_operand.vmem [shape: f32[1,128], index: 2, kind: input, shape index: {}]   ;;  %s1194_s3 = inlined_call_operand.hbm [shape: bf16[128,128], index: 3, kind: input, shape index: {}]   ;;  %s1195_s4 = inlined_call_operand.vmem [shape: f32[1,128], index: 4, kind: input, shape index: {}]   ;;  %s1196_s5 = inlined_call_operand.hbm [shape: bf16[128,256], index: 5, kind: input, shape index: {}]   ;;  %s1197_s6 = inlined_call_operand.vmem [shape: f32[1,256], index: 6, kind: input, shape index: {}]   ;;  %s1198_s7 = inlined_call_operand.hbm [shape: bf16[256,128], index: 7, kind: input, shape index: {}]   ;;  %s1199_s8 = inlined_call_operand.vmem [shape: f32[1,128], index: 8, kind: input, shape index: {}]   ;;  %s1200_s9 = inlined_call_operand.hbm [shape: f32[8,128], index: 9, kind: output, shape index: {}]  }
   0x1   :  { %15 = vsyncpa [#allocation6], 0 }
   0x2   :  { %16 = vsyncpa [#allocation9], 0 }
   0x3   :  { %17 = vsyncpa [#allocation4], 0  ;;  %s1028_s30 = smov [#allocation5]   ;;  %s888_s13 = scalar_lea.hbm %s1192_s1, 1024 }
   0x4   :  { %s33_s10 = sshll.u32 %s1028_s30, 4  ;;  %p889_p0 = scmp.ne.s32.totalorder %s1192_s1, %s888_s13  ;;  %s34_s10 = int_to_ptr.vmem [resolvable:$true] %s33_s10 }
   0x5   :  { %p892_p1 = scmp.lt.u32.totalorder %s888_s13, %s1192_s1 }
   0x7   :  { %p894_p2 = pnand %p892_p1, %p889_p0 }
   0x9   :  { %897 = shalt.err (!%p894_p2)
}
   0xa   :  { %s898_s18 = scalar_lea.vmem %s34_s10, 1024  ;;  %p903_p4 = scmp.lt.s32.totalorder %s34_s10, %s34_s10 }
   0xb   :  { %p899_p3 = scmp.ne.s32.totalorder %s34_s10, %s898_s18  ;;  %p904_p5 = scmp.lt.s32.totalorder %s898_s18, %s898_s18 }
   0xd   :  { %p905_p6 = por %p904_p5, %p903_p4 }
   0xf   :  { %p906_p7 = pnand %p905_p6, %p899_p3 }
  0x11   :  { %909 = shalt.err (!%p906_p7)
}
  0x12   :  { %s1029_s19 = smov 64   ;;  %s1030_s20 = smov 4  }
  0x13   :  { %39 = dma.hbm_to_vmem [thread:$0]  %s1192_s1, 1024, %s34_s10, [#allocation6], %s1029_s19, %s1029_s19, %s1030_s20  }
  0x14   :  { %s1031_s23 = smov [#allocation8]   ;;  %s910_s27 = scalar_lea.hbm %s1196_s5, 2048 }
  0x15   :  { %s61_s24 = sshll.u32 %s1031_s23, 4  ;;  %p911_p8 = scmp.ne.s32.totalorder %s1196_s5, %s910_s27  ;;  %s62_s24 = int_to_ptr.vmem [resolvable:$true] %s61_s24 }
  0x16   :  { %p914_p9 = scmp.lt.u32.totalorder %s910_s27, %s1196_s5 }
  0x18   :  { %p916_p10 = pnand %p914_p9, %p911_p8 }
  0x1a   :  { %919 = shalt.err (!%p916_p10)
}
  0x1b   :  { %s920_s12 = scalar_lea.vmem %s62_s24, 2048  ;;  %p925_p12 = scmp.lt.s32.totalorder %s62_s24, %s62_s24 }
  0x1c   :  { %p921_p11 = scmp.ne.s32.totalorder %s62_s24, %s920_s12  ;;  %p926_p13 = scmp.lt.s32.totalorder %s920_s12, %s920_s12 }
  0x1e   :  { %p927_p0 = por %p926_p13, %p925_p12 }
  0x20   :  { %p928_p1 = pnand %p927_p0, %p921_p11 }
  0x22   :  { %931 = shalt.err (!%p928_p1)
}
  0x23   :  { %s1032_s1 = smov 128   ;;  %s1033_s10 = smov 8  }
  0x24   :  { %67 = dma.hbm_to_vmem [thread:$0]  %s1196_s5, 2048, %s62_s24, [#allocation9], %s1032_s1, %s1032_s1, %s1033_s10  }
  0x25   :  { %s1034_s15 = smov [#allocation2]   ;;  %s1035_s17 = smov [#allocation7]  }
  0x26   :  { %s24_s16 = sshll.u32 %s1034_s15, 4  ;;  %s47_s18 = sshll.u32 %s1035_s17, 4  ;;  %s25_s16 = int_to_ptr.vmem [resolvable:$true] %s24_s16  ;;  %s1118_s18 = int_to_ptr.vmem [resolvable:$true] %s47_s18 }
  0x27   :  { %s932_s23 = scalar_lea.hbm %s1191_s0, 64 }
  0x28   :  { %p933_p2 = scmp.ne.s32.totalorder %s1191_s0, %s932_s23  ;;  %p936_p3 = scmp.lt.u32.totalorder %s932_s23, %s1191_s0 }
  0x2a   :  { %p938_p4 = pnand %p936_p3, %p933_p2 }
  0x2c   :  { %941 = shalt.err (!%p938_p4)
}
  0x2d   :  { %s942_s5 = scalar_lea.vmem %s25_s16, 64  ;;  %p947_p6 = scmp.lt.s32.totalorder %s25_s16, %s25_s16 }
  0x2e   :  { %p943_p5 = scmp.ne.s32.totalorder %s25_s16, %s942_s5  ;;  %p948_p7 = scmp.lt.s32.totalorder %s942_s5, %s942_s5 }
  0x30   :  { %p949_p8 = por %p948_p7, %p947_p6 }
  0x32   :  { %p950_p9 = pnand %p949_p8, %p943_p5 }
  0x34   :  { %953 = shalt.err (!%p950_p9)
}
  0x35   :  { %27 = dma.hbm_to_vmem [thread:$0]  %s1191_s0, 64, %s25_s16, [#allocation3]  }
  0x36   :  { %s954_s12 = scalar_lea.hbm %s1194_s3, 1024 }
  0x37   :  { %p955_p10 = scmp.ne.s32.totalorder %s1194_s3, %s954_s12  ;;  %p958_p11 = scmp.lt.u32.totalorder %s954_s12, %s1194_s3 }
  0x39   :  { %p960_p12 = pnand %p958_p11, %p955_p10 }
  0x3b   :  { %963 = shalt.err (!%p960_p12)
}
  0x3c   :  { %s964_s15 = scalar_lea.vmem %s1118_s18, 1024  ;;  %p969_p0 = scmp.lt.s32.totalorder %s1118_s18, %s1118_s18 }
  0x3d   :  { %p965_p13 = scmp.ne.s32.totalorder %s1118_s18, %s964_s15  ;;  %p970_p1 = scmp.lt.s32.totalorder %s964_s15, %s964_s15 }
  0x3f   :  { %p971_p2 = por %p970_p1, %p969_p0 }
  0x41   :  { %p972_p3 = pnand %p971_p2, %p965_p13 }
  0x43   :  { %975 = shalt.err (!%p972_p3)
}
  0x44   :  { %53 = dma.hbm_to_vmem [thread:$0]  %s1194_s3, 1024, %s1118_s18, [#allocation6], %s1029_s19, %s1029_s19, %s1030_s20  }
  0x45   :  { %s1036_s17 = smov [#allocation10]   ;;  %s976_s25 = scalar_lea.hbm %s1198_s7, 2048 }
  0x46   :  { %s75_s21 = sshll.u32 %s1036_s17, 4  ;;  %p977_p4 = scmp.ne.s32.totalorder %s1198_s7, %s976_s25  ;;  %s76_s21 = int_to_ptr.vmem [resolvable:$true] %s75_s21 }
  0x47   :  { %p980_p5 = scmp.lt.u32.totalorder %s976_s25, %s1198_s7 }
  0x49   :  { %p982_p6 = pnand %p980_p5, %p977_p4 }
  0x4b   :  { %985 = shalt.err (!%p982_p6)
}
  0x4c   :  { %s986_s24 = scalar_lea.vmem %s76_s21, 2048  ;;  %p991_p8 = scmp.lt.s32.totalorder %s76_s21, %s76_s21 }
  0x4d   :  { %p987_p7 = scmp.ne.s32.totalorder %s76_s21, %s986_s24  ;;  %p992_p9 = scmp.lt.s32.totalorder %s986_s24, %s986_s24 }
  0x4f   :  { %p993_p10 = por %p992_p9, %p991_p8 }
  0x51   :  { %p994_p11 = pnand %p993_p10, %p987_p7 }
  0x53   :  { %997 = shalt.err (!%p994_p11)
}
  0x54   :  { %81 = dma.hbm_to_vmem [thread:$0]  %s1198_s7, 2048, %s76_s21, [#allocation9], %s1029_s19, %s1029_s19, %s1030_s20  }
  0x55   :  { %1020 = dma.done.wait [#allocation3], 64  }
  0x56   :  { %1021 = vsyncadd [#allocation3], 4294967232 }
  0x57   :  { %1022 = dma.done.wait [#allocation6], 2048  }
  0x58   :  { %1023 = vsyncadd [#allocation6], 4294965248 }
  0x59   :  { %1024 = dma.done.wait [#allocation9], 4096  }
  0x5a   :  { %1025 = vsyncadd [#allocation9], 4294963200  ;;  %v1037_v0 = vmov 0.0   ;;  %vm1038_vm0 = vmmov 0   ;;  %v828_v1 = vld [vmem:[#allocation5] sm:$0xff]   ;;  %v829_v2 = vld [vmem:[#allocation5 + $0x8] sm:$0xff]  }
  0x5b   :  { %775 = vmatprep.subr.bf16.mxu0 %v1037_v0  ;;  %791 = vmatprep.mubr.msk.bf16.mxu0 %vm1038_vm0, %v1037_v0  ;;  %v830_v3 = vld [vmem:[#allocation5 + $0x10] sm:$0xff]   ;;  %v836_v4 = vld [vmem:[#allocation7] sm:$0xff]   ;;  %v831_v5 = vld [vmem:[#allocation5 + $0x18] sm:$0xff]   ;;  %v1039_v42 = vmov 0  }
  0x5c   :  { %795 = vmatprep.subr.bf16.mxu1 %v1037_v0  ;;  %811 = vmatprep.mubr.msk.bf16.mxu1 %vm1038_vm0, %v1037_v0  ;;  %v837_v6 = vld [vmem:[#allocation7 + $0x8] sm:$0xff]   ;;  %v832_v7 = vld [vmem:[#allocation5 + $0x20] sm:$0xff]   ;;  %v838_v8 = vld [vmem:[#allocation7 + $0x10] sm:$0xff]  }
  0x5d   :  { %776 = vmatpush3.bf16.msra.mxu0 %v828_v1  ;;  %796 = vmatpush3.bf16.msra.mxu1 %v836_v4  ;;  %v833_v9 = vld [vmem:[#allocation5 + $0x28] sm:$0xff]   ;;  %v839_v10 = vld [vmem:[#allocation7 + $0x18] sm:$0xff]   ;;  %v834_v11 = vld [vmem:[#allocation5 + $0x30] sm:$0xff]  }
  0x5e   :  { %777 = vmatprep.subr.bf16.mxu0 %v1037_v0  ;;  %797 = vmatprep.subr.bf16.mxu1 %v1037_v0  ;;  %v840_v12 = vld [vmem:[#allocation7 + $0x20] sm:$0xff]   ;;  %v835_v13 = vld [vmem:[#allocation5 + $0x38] sm:$0xff]   ;;  %v841_v14 = vld [vmem:[#allocation7 + $0x28] sm:$0xff]  }
  0x5f   :  { %v100_v15 = vld [vmem:[#allocation2] sm:$0xf]  ;;  %v842_v16 = vld [vmem:[#allocation7 + $0x30] sm:$0xff]   ;;  %v844_v18 = vld [vmem:[#allocation8] ss:$8 sps:$4 sm:$0xff]  }
  0x60   :  { %v843_v17 = vld [vmem:[#allocation7 + $0x38] sm:$0xff]   ;;  %v846_v19 = vld [vmem:[#allocation8 + $0x4] ss:$8 sps:$4 sm:$0xff]   ;;  %v850_v23 = vld [vmem:[#allocation8 + $0x20] ss:$8 sps:$4 sm:$0xff]  }
  0x61   :  { %778 = vmatpush3.bf16.msra.mxu0 %v829_v2  ;;  %798 = vmatpush3.bf16.msra.mxu1 %v837_v6  ;;  %v849_v20 = vld [vmem:[#allocation8 + $0x14] ss:$8 sps:$4 sm:$0xff]   ;;  %v847_v21 = vld [vmem:[#allocation8 + $0x10] ss:$8 sps:$4 sm:$0xff]   ;;  %v852_v22 = vld [vmem:[#allocation8 + $0x24] ss:$8 sps:$4 sm:$0xff]  }
  0x62   :  { %779 = vmatprep.subr.bf16.mxu0 %v1037_v0  ;;  %799 = vmatprep.subr.bf16.mxu1 %v1037_v0  ;;  %v855_v24 = vld [vmem:[#allocation8 + $0x34] ss:$8 sps:$4 sm:$0xff]   ;;  %v853_v25 = vld [vmem:[#allocation8 + $0x30] ss:$8 sps:$4 sm:$0xff]   ;;  %v858_v26 = vld [vmem:[#allocation8 + $0x44] ss:$8 sps:$4 sm:$0xff]  }
  0x63   :  { %v856_v27 = vld [vmem:[#allocation8 + $0x40] ss:$8 sps:$4 sm:$0xff]   ;;  %v861_v28 = vld [vmem:[#allocation8 + $0x54] ss:$8 sps:$4 sm:$0xff]   ;;  %v859_v29 = vld [vmem:[#allocation8 + $0x50] ss:$8 sps:$4 sm:$0xff]  }
  0x64   :  { %v864_v30 = vld [vmem:[#allocation8 + $0x64] ss:$8 sps:$4 sm:$0xff]   ;;  %v862_v31 = vld [vmem:[#allocation8 + $0x60] ss:$8 sps:$4 sm:$0xff]   ;;  %v683_v32 = vld [vmem:[%s1193_s2] ss:$0 sm:$0xff] }
  0x65   :  { %780 = vmatpush3.bf16.msra.mxu0 %v830_v3  ;;  %800 = vmatpush3.bf16.msra.mxu1 %v838_v8  ;;  %v867_v40 = vld [vmem:[#allocation8 + $0x74] ss:$8 sps:$4 sm:$0xff]   ;;  %v865_v41 = vld [vmem:[#allocation8 + $0x70] ss:$8 sps:$4 sm:$0xff]   ;;  %v868_v43 = vld [vmem:[#allocation10 + $0x40] sm:$0xff]   ;;  %v345_v3 = vlaneseq }
  0x66   :  { %781 = vmatprep.subr.bf16.mxu0 %v1037_v0  ;;  %801 = vmatprep.subr.bf16.mxu1 %v1037_v0  ;;  %v869_v44 = vld [vmem:[#allocation10] sm:$0xff]   ;;  %v870_v45 = vld [vmem:[#allocation10 + $0x48] sm:$0xff]   ;;  %v872_v47 = vld [vmem:[#allocation10 + $0x50] sm:$0xff]  }
  0x67   :  { %v871_v46 = vld [vmem:[#allocation10 + $0x8] sm:$0xff]   ;;  %v873_v48 = vld [vmem:[#allocation10 + $0x10] sm:$0xff]   ;;  %v874_v49 = vld [vmem:[#allocation10 + $0x58] sm:$0xff]   ;;  %v346_v4 = vshrl.u32 %v345_v3, 7 }
  0x68   :  { %v875_v50 = vld [vmem:[#allocation10 + $0x18] sm:$0xff]   ;;  %v876_v51 = vld [vmem:[#allocation10 + $0x60] sm:$0xff]   ;;  %v878_v53 = vld [vmem:[#allocation10 + $0x68] sm:$0xff]  }
  0x69   :  { %782 = vmatpush3.bf16.msra.mxu0 %v831_v5  ;;  %802 = vmatpush3.bf16.msra.mxu1 %v839_v10  ;;  %v877_v52 = vld [vmem:[#allocation10 + $0x20] sm:$0xff]   ;;  %v879_v54 = vld [vmem:[#allocation10 + $0x28] sm:$0xff]   ;;  %v692_v55 = vld [vmem:[%s1195_s4] ss:$0 sm:$0xff]  ;;  %v347_v5 = vsub.s32 0, %v346_v4 }
  0x6a   :  { %783 = vmatprep.subr.bf16.mxu0 %v1037_v0  ;;  %803 = vmatprep.subr.bf16.mxu1 %v1037_v0  ;;  %v880_v63 = vld [vmem:[#allocation10 + $0x70] sm:$0xff]   ;;  %v882_v1 = vld [vmem:[#allocation10 + $0x78] sm:$0xff]  }
  0x6b   :  { %v883_v2 = vld [vmem:[#allocation10 + $0x38] sm:$0xff]  }
  0x6c   :  { %v343_v6 = vld [vmem:[%s1197_s6] sm:$0x3]  ;;  %s1040_s6 = smov [#allocation11]  }
  0x6d   :  { %784 = vmatpush3.bf16.msra.mxu0 %v832_v7  ;;  %804 = vmatpush3.bf16.msra.mxu1 %v840_v12  ;;  %v351_v7 = vsub.s32 1, %v346_v4  ;;  %v348_v8 = vrot.slane %v343_v6, %v347_v5  ;;  %s672_s12 = sshll.u32 %s1040_s6, 4  ;;  %s673_s12 = int_to_ptr.vmem [resolvable:$true] %s672_s12 }
  0x6e   :  { %785 = vmatprep.subr.bf16.mxu0 %v1037_v0  ;;  %805 = vmatprep.subr.bf16.mxu1 %v1037_v0  ;;  %s998_s1 = scalar_lea.vmem %s673_s12, 128  ;;  %p1003_p13 = scmp.lt.s32.totalorder %s673_s12, %s673_s12 }
  0x6f   :  { %p999_p12 = scmp.ne.s32.totalorder %s673_s12, %s998_s1  ;;  %p1004_p0 = scmp.lt.s32.totalorder %s998_s1, %s998_s1 }
  0x71   :  { %786 = vmatpush3.bf16.msra.mxu0 %v833_v9  ;;  %806 = vmatpush3.bf16.msra.mxu1 %v841_v14  ;;  %v352_v9 = vrot.slane %v343_v6, %v351_v7  ;;  %p1005_p1 = por %p1004_p0, %p1003_p13 }
  0x72   :  { %787 = vmatprep.subr.bf16.mxu0 %v1037_v0  ;;  %807 = vmatprep.subr.bf16.mxu1 %v1037_v0 }
  0x73   :  { %p1006_p2 = pnand %p1005_p1, %p999_p12 }
  0x75   :  { %788 = vmatpush3.bf16.msra.mxu0 %v834_v11  ;;  %808 = vmatpush3.bf16.msra.mxu1 %v842_v16 }
  0x76   :  { %789 = vmatprep.subr.bf16.mxu0 %v1037_v0  ;;  %809 = vmatprep.subr.bf16.mxu1 %v1037_v0  ;;  %v881_v0 = vld [vmem:[#allocation10 + $0x30] sm:$0xff]  }
  0x79   :  { %790 = vmatpush3.bf16.msra.mxu0 %v835_v13  ;;  %810 = vmatpush3.bf16.msra.mxu1 %v843_v17 }
  0x7a   :  { %435 = vmatprep.subr.bf16.mxu0 %v846_v19  ;;  %753 = vmatprep.subr.bf16.mxu1 %v868_v43 }
  0x7c   :  { %792 = vmatmul.mubr.bf16.vlgmr.msra.gmra.mrb[0].mxu0 %v100_v15 }
  0x7d   :  { %436 = vmatpush1.bf16.msra.mxu0 %v844_v18  ;;  %467 = vmatprep.mubr.bf16.mxu0 %v1039_v42 }
  0x7e   :  { %437 = vmatprep.subr.bf16.mxu0 %v849_v20 }
  0x81   :  { %438 = vmatpush1.bf16.msra.mxu0 %v847_v21  ;;  %v717_v21 = vld [vmem:[%s1199_s8] ss:$0 sm:$0xff] }
  0x82   :  { %439 = vmatprep.subr.bf16.mxu0 %v852_v22 }
  0x85   :  { %440 = vmatpush1.bf16.msra.mxu0 %v850_v23 }
  0x86   :  { %441 = vmatprep.subr.bf16.mxu0 %v855_v24 }
  0x89   :  { %442 = vmatpush1.bf16.msra.mxu0 %v853_v25 }
  0x8a   :  { %443 = vmatprep.subr.bf16.mxu0 %v858_v26 }
  0x8d   :  { %444 = vmatpush1.bf16.msra.mxu0 %v856_v27 }
  0x8e   :  { %445 = vmatprep.subr.bf16.mxu0 %v861_v28 }
  0x91   :  { %446 = vmatpush1.bf16.msra.mxu0 %v859_v29 }
  0x92   :  { %447 = vmatprep.subr.bf16.mxu0 %v864_v30  ;;  %v656_v30 = vand.u32 127, %v345_v3 }
  0x94   :  { %vm657_vm1 = vcmp.lt.s32.totalorder %v656_v30, 4 }
  0x95   :  { %448 = vmatpush1.bf16.msra.mxu0 %v862_v31 }
  0x96   :  { %449 = vmatprep.subr.bf16.mxu0 %v867_v40 }
  0x99   :  { %450 = vmatpush1.bf16.msra.mxu0 %v865_v41 }
 0x14f   :  { %v206_v33 = vpop.f32.mrb[0].mxu0 }
 0x150   :  { %v207_v34 = vadd.f32 %v683_v32, %v206_v33  ;;  %v793_v35 = vpop.f32.mrb[1].mxu0 }
 0x151   :  { %v209_v36 = vpop.f32.mrb[2].mxu0 }
 0x152   :  { %v212_v37 = vmax.f32 %v207_v34, 0.0  ;;  %v794_v38 = vpop.f32.mrb[3].mxu0 }
 0x154   :  { %v213_v39 = vpack.c.bf16 %v212_v37, %v212_v37 }
 0x156   :  { %812 = vmatmul.mubr.bf16.vlgmr.msra.gmra.mrb[0].mxu1 %v213_v39 }
 0x157   :  { %754 = vmatpush3.bf16.msra.mxu1 %v869_v44 }
 0x158   :  { %755 = vmatprep.subr.bf16.mxu1 %v870_v45 }
 0x15b   :  { %756 = vmatpush3.bf16.msra.mxu1 %v871_v46 }
 0x15c   :  { %757 = vmatprep.subr.bf16.mxu1 %v872_v47 }
 0x15f   :  { %758 = vmatpush3.bf16.msra.mxu1 %v873_v48 }
 0x160   :  { %759 = vmatprep.subr.bf16.mxu1 %v874_v49 }
 0x163   :  { %760 = vmatpush3.bf16.msra.mxu1 %v875_v50 }
 0x164   :  { %761 = vmatprep.subr.bf16.mxu1 %v876_v51 }
 0x167   :  { %762 = vmatpush3.bf16.msra.mxu1 %v877_v52 }
 0x168   :  { %763 = vmatprep.subr.bf16.mxu1 %v878_v53 }
 0x16b   :  { %764 = vmatpush3.bf16.msra.mxu1 %v879_v54 }
 0x16c   :  { %765 = vmatprep.subr.bf16.mxu1 %v880_v63 }
 0x16f   :  { %766 = vmatpush3.bf16.msra.mxu1 %v881_v0 }
 0x170   :  { %767 = vmatprep.subr.bf16.mxu1 %v882_v1 }
 0x173   :  { %768 = vmatpush3.bf16.msra.mxu1 %v883_v2 }
 0x229   :  { %v319_v56 = vpop.f32.mrb[0].mxu1 }
 0x22a   :  { %v320_v57 = vadd.f32 %v692_v55, %v319_v56  ;;  %v813_v58 = vpop.f32.mrb[1].mxu1 }
 0x22b   :  { %v322_v59 = vpop.f32.mrb[2].mxu1 }
 0x22c   :  { %v325_v60 = vmax.f32 %v320_v57, 0.0  ;;  %v814_v61 = vpop.f32.mrb[3].mxu1 }
 0x22e   :  { %v326_v62 = vpack.c.bf16 %v325_v60, %v325_v60 }
 0x230   :  { %468 = vmatmul.mubr.bf16.vlgmr.msra.gmra.mrb[4].mxu0 %v326_v62 }
 0x303   :  { %v469_v10 = vpop.f32.mrb[4].mxu0 }
 0x304   :  { %v470_v11 = vadd.f32 %v469_v10, %v348_v8  ;;  %v471_v12 = vpop.f32.mrb[5].mxu0 }
 0x305   :  { %v472_v13 = vadd.f32 %v471_v12, %v352_v9  ;;  %v473_v14 = vpop.f32.mrb[6].mxu0 }
 0x306   :  { %v476_v15 = vmax.f32 %v470_v11, 0.0  ;;  %v474_v16 = vpop.f32.mrb[7].mxu0 }
 0x307   :  { %v477_v17 = vmax.f32 %v472_v13, 0.0 }
 0x308   :  { %v478_v19 = vpack.c.bf16 %v476_v15, %v476_v15 }
 0x309   :  { %v479_v18 = vpack.c.bf16 %v477_v17, %v477_v17 }
 0x30b   :  { %647 = vmatprep.mubr.bf16.mxu1 %v479_v18 }
 0x30c   :  { %648 = vmatmul.mubr.bf16.vlgmr.msra.gmra.mrb[4].mxu1 %v478_v19 }
 0x3df   :  { %v769_v20 = vpop.f32.mrb[4].mxu1 }
 0x3e0   :  { %v770_v22 = vpop.f32.mrb[5].mxu1 }
 0x3e1   :  { %v771_v23 = vadd.f32 %v770_v22, %v769_v20  ;;  %v772_v24 = vpop.f32.mrb[6].mxu1 }
 0x3e2   :  { %v773_v25 = vpop.f32.mrb[7].mxu1 }
 0x3e3   :  { %v650_v26 = vadd.f32 %v771_v23, %v717_v21 }
 0x3e5   :  { %v734_v27 = vmul.f32 -1.442695, %v650_v26 }
 0x3e7   :  { %884 = vpow2.f32 %v734_v27 }
 0x3f1   :  { %v885_v28 = vpop.eup %884 }
 0x3f2   :  { %v661_v29 = vadd.f32 1.0, %v885_v28 }
 0x3f4   :  { %886 = vrcp.f32 %v661_v29 }
 0x3fe   :  { %v887_v31 = vpop.eup %886 }
 0x3ff   :  { %v664_v32 = vsel %vm657_vm1, %v887_v31, %v650_v26 }
 0x400   :  { %665 = vst [vmem:[#allocation11] sm:$0xff] %v664_v32 }
 0x401   :  { %1009 = shalt.err (!%p1006_p2)
}
 0x402   :  { %s1010_s13 = scalar_lea.hbm %s1200_s9, 128 }
 0x403   :  { %p1011_p3 = scmp.ne.s32.totalorder %s1200_s9, %s1010_s13  ;;  %p1014_p4 = scmp.lt.u32.totalorder %s1010_s13, %s1200_s9 }
 0x405   :  { %p1016_p5 = pnand %p1014_p4, %p1011_p3 }
 0x407   :  { %1019 = shalt.err (!%p1016_p5)
}
 0x408   :  { %675 = dma.vmem_to_hbm [thread:$0]  %s673_s12, 128, %s1200_s9, [#allocation4]  }
 0x409   :  { %1026 = dma.done.wait [#allocation4], 128  }
 0x40a   :  { %1027 = vsyncadd [#allocation4], 4294967168 }
 0x40b   :  { %679 = vsyncpa [#allocation3], 1 }
 0x40c   :  { %680 = vsyncpa [#allocation6], 1 }
 0x40d   :  { %681 = vsyncpa [#allocation9], 1 }
 0x40e   :  { %682 = vsyncpa [#allocation4], 1 }

</bundles_post_ra>
